<compile_context>
chip_gen: v5e
topology: v5e:2x2
jax: 0.10.0
libtpu: 0.0.40
codegen_flags: <defaults>
</compile_context>

<pallas_src>
import math

import jax
import jax.numpy as jnp
from jax.experimental import pallas as pl
from jax.experimental.pallas import tpu as pltpu


# ---------------------------------------------------------------------------
# Kernels
# ---------------------------------------------------------------------------

def _identity_kernel(x_ref, o_ref):
    # Forward of the GRL: R(x) = x (one tile copy per grid step).
    o_ref[...] = x_ref[...]


def _neg_scale_kernel(coeff_ref, g_ref, o_ref):
    # Backward of the GRL: dL/dx = -coeff * dL/dy.
    # coeff is a runtime scalar living in SMEM -> no recompile per schedule value.
    neg_coeff = -coeff_ref[0]
    o_ref[...] = (g_ref[...].astype(jnp.float32) * neg_coeff).astype(o_ref.dtype)


# ---------------------------------------------------------------------------
# Layout / tiling helpers
# ---------------------------------------------------------------------------

def _lane_dense_2d(x):
    """Reshape an arbitrary tensor into a lane-dense (rows, lanes) slab."""
    shape = x.shape
    total = int(x.size)
    if total == 0:
        return x.reshape(1, 1), shape
    # Prefer a lane width that is a multiple of 128 so every vreg lane is live.
    for lanes in (512, 256, 128):
        if total % lanes == 0:
            return x.reshape(total // lanes, lanes), shape
    # Fallback: keep the trailing dim on lanes (full-dim block is always legal).
    last = shape[-1] if x.ndim >= 1 else 1
    return x.reshape(total // last, last), shape


def _row_tiling(rows, lanes, itemsize):
    """Multiple-of-8 row tile sized at ~2 MiB/block so double-buffered input +
    output stay well under the scoped-VMEM default on v5e/v6e/v7x."""
    target_bytes = 2 * 1024 * 1024
    tile = max(8, (target_bytes // max(1, lanes * itemsize)) // 8 * 8)
    if rows <= tile:
        return rows, 1          # full-extent block (always layout-legal)
    return tile, pl.cdiv(rows, tile)


# ---------------------------------------------------------------------------
# pallas_call wrappers
# ---------------------------------------------------------------------------

def _identity_pallas(x):
    x2d, orig_shape = _lane_dense_2d(x)
    rows, lanes = x2d.shape
    tile_r, n_blocks = _row_tiling(rows, lanes, jnp.dtype(x2d.dtype).itemsize)
    out = pl.pallas_call(
        _identity_kernel,
        out_shape=jax.ShapeDtypeStruct((rows, lanes), x2d.dtype),
        grid=(n_blocks,),
        in_specs=[pl.BlockSpec((tile_r, lanes), lambda i: (i, 0))],
        out_specs=pl.BlockSpec((tile_r, lanes), lambda i: (i, 0)),
        compiler_params=pltpu.CompilerParams(
            dimension_semantics=("parallel",)),
    )(x2d)
    return out.reshape(orig_shape)


def _neg_scale_pallas(g, coeff):
    g2d, orig_shape = _lane_dense_2d(g)
    rows, lanes = g2d.shape
    tile_r, n_blocks = _row_tiling(rows, lanes, jnp.dtype(g2d.dtype).itemsize)
    out = pl.pallas_call(
        _neg_scale_kernel,
        out_shape=jax.ShapeDtypeStruct((rows, lanes), g2d.dtype),
        grid=(n_blocks,),
        in_specs=[
            pl.BlockSpec(memory_space=pltpu.MemorySpace.SMEM),   # coeff: (1,) f32
            pl.BlockSpec((tile_r, lanes), lambda i: (i, 0)),
        ],
        out_specs=pl.BlockSpec((tile_r, lanes), lambda i: (i, 0)),
        compiler_params=pltpu.CompilerParams(
            dimension_semantics=("parallel",)),
    )(coeff, g2d)
    return out.reshape(orig_shape)


# ---------------------------------------------------------------------------
# Gradient-reversal function (custom VJP) and the warm-start layer
# ---------------------------------------------------------------------------

@jax.custom_vjp
def gradient_reverse(x, coeff):
    """R(x) = x forward; backward multiplies the cotangent by -coeff."""
    return _identity_pallas(x)


def _gradient_reverse_fwd(x, coeff):
    return _identity_pallas(x), coeff


def _gradient_reverse_bwd(coeff, g):
    return _neg_scale_pallas(g, coeff), jnp.zeros_like(coeff)


gradient_reverse.defvjp(_gradient_reverse_fwd, _gradient_reverse_bwd)


def _schedule_coeff(alpha, lo, hi, iter_num, max_iters):
    return float(2.0 * (hi - lo) / (1.0 + math.exp(-alpha * iter_num / max_iters))
                 - (hi - lo) + lo)


class WarmStartGradientReverseLayer:
    """JAX / Pallas port of the PyTorch WarmStartGradientReverseLayer."""

    def __init__(self, alpha=1.0, lo=0.0, hi=1.0, max_iters=1000, auto_step=False):
        self.alpha = alpha
        self.lo = lo
        self.hi = hi
        self.iter_num = 0
        self.max_iters = max_iters
        self.auto_step = auto_step

    def __call__(self, x):
        coeff = _schedule_coeff(self.alpha, self.lo, self.hi,
                                self.iter_num, self.max_iters)
        if self.auto_step:
            self.step()
        # coeff is passed as runtime DATA, so the pallas_call compiles once per
        # shape/dtype no matter how the warm-start schedule evolves.
        return gradient_reverse(x, jnp.asarray([coeff], dtype=jnp.float32))

    def step(self):
        """Increase iteration number i by 1 (host-side state)."""
        self.iter_num += 1


if __name__ == "__main__":
    key = jax.random.PRNGKey(0)
    x = jax.random.normal(key, (2, 4, 16, 16), dtype=jnp.float32)

    grl = WarmStartGradientReverseLayer(alpha=1.0, lo=0.0, hi=1.0,
                                        max_iters=1000, auto_step=True)

    # Forward (iteration 0): identity through the Pallas copy kernel.
    y = grl(x)
    jax.block_until_ready(y)
    assert float(jnp.max(jnp.abs(y - x))) < 1e-6

    # Backward (iteration 1): exercise the gradient-reversal Pallas kernel.
    expected_coeff = _schedule_coeff(grl.alpha, grl.lo, grl.hi,
                                     grl.iter_num, grl.max_iters)
    grad_x = jax.grad(lambda inp: jnp.sum(grl(inp)))(x)
    jax.block_until_ready(grad_x)
    assert float(jnp.max(jnp.abs(grad_x + expected_coeff))) < 1e-6

    print("KERNEL_OK")
</pallas_src>

<mosaic_0001>
module attributes {stable_mosaic.version = 11 : i64} {
  func.func @_identity_kernel(%arg0: i32, %arg1: memref<4x512xf32, #tpu.memory_space<vmem>>, %arg2: memref<4x512xf32, #tpu.memory_space<vmem>>) attributes {dimension_semantics = [#tpu.dimension_semantics<parallel>], iteration_bounds = array<i64: 1>, scalar_prefetch = 0 : i64, scratch_operands = 0 : i64, tpu.core_type = #tpu.core_type<tc>, window_params = [{transform_indices = @transform_0, window_bounds = array<i64: 4, 512>}, {transform_indices = @transform_1, window_bounds = array<i64: 4, 512>}]} {
    %c0 = arith.constant 0 : index
    %c0_0 = arith.constant 0 : index
    %0 = vector.load %arg1[%c0, %c0_0] : memref<4x512xf32, #tpu.memory_space<vmem>>, vector<4x512xf32>
    %c0_1 = arith.constant 0 : index
    %c0_2 = arith.constant 0 : index
    %1 = vector.load %arg2[%c0_1, %c0_2] : memref<4x512xf32, #tpu.memory_space<vmem>>, vector<4x512xf32>
    tpu.vector_store %arg2[%c0_1, %c0_2], %0 {strides = array<i32>} : memref<4x512xf32, #tpu.memory_space<vmem>>, vector<4x512xf32>,
    return
  }
  func.func @transform_0(%arg0: i32) -> (i32, i32) {
    %c0_i32 = arith.constant 0 : i32
    %c0_i32_0 = arith.constant 0 : i32
    return %arg0, %c0_i32 : i32, i32
  }
  func.func @transform_1(%arg0: i32) -> (i32, i32) {
    %c0_i32 = arith.constant 0 : i32
    %c0_i32_0 = arith.constant 0 : i32
    return %arg0, %c0_i32 : i32, i32
  }
}

</mosaic_0001>

<bundles_post_ra>
// kernel: tpu_custom_call.1
= control target key start
LH: loop header
LB: loop body
LE: loop exit
PB: predicated region body
PF: predicated region fallthrough
CT: control target
= control target key end

     0   :  { %6 = vsyncpa [#allocation3], 0  ;;  %s116_s0 = inlined_call_operand.hbm [shape: f32[4,512], index: 0, kind: input, shape index: {}]   ;;  %s117_s1 = inlined_call_operand.hbm [shape: f32[4,512], index: 1, kind: output, shape index: {}]  }
   0x1   :  { %7 = vsyncpa [#allocation4], 0  ;;  %s13_s8 = sshll.u32 %s116_s0, 4  ;;  %s98_s9 = smov [#allocation2]   ;;  %s14_s8 = int_to_ptr.hbm [resolvable:$true] %s13_s8 }
   0x2   :  { %s15_s10 = sshll.u32 %s98_s9, 4  ;;  %s16_s10 = int_to_ptr.vmem [resolvable:$true] %s15_s10 }
   0x3   :  { %18 = dma.hbm_to_vmem [thread:$0]  %s14_s8, 256, %s16_s10, [#allocation3]  }
   0x4   :  { %94 = dma.done.wait [#allocation3], 256  }
   0x5   :  { %95 = vsyncadd [#allocation3], 4294967040  ;;  %s99_s11 = smov [#allocation5]   ;;  %s34_s15 = sshll.u32 %s117_s1, 4  ;;  %v23_v0 = vld [vmem:[#allocation2] sm:$0xff]  ;;  %v24_v1 = vld [vmem:[#allocation2 + $0x8] sm:$0xff]  ;;  %s35_s15 = int_to_ptr.hbm [resolvable:$true] %s34_s15 }
   0x6   :  { %s32_s12 = sshll.u32 %s99_s11, 4  ;;  %25 = vst [vmem:[#allocation5] sm:$0xff] %v23_v0  ;;  %s33_s12 = int_to_ptr.vmem [resolvable:$true] %s32_s12 }
   0x7   :  { %26 = vst [vmem:[#allocation5 + $0x8] sm:$0xff] %v24_v1 }
   0x8   :  { %37 = dma.vmem_to_hbm [thread:$0]  %s33_s12, 256, %s35_s15, [#allocation4]  }
   0x9   :  { %96 = dma.done.wait [#allocation4], 256  }
   0xa   :  { %97 = vsyncadd [#allocation4], 4294967040 }
   0xb   :  { %42 = vsyncpa [#allocation3], 1 }
   0xc   :  { %43 = vsyncpa [#allocation4], 1 }

</bundles_post_ra>
